<compile_context>
chip_gen: v7x
topology: tpu7x:2x2x1
jax: 0.10.0
libtpu: 0.0.40
codegen_flags: <defaults>
</compile_context>

<pallas_src>
import jax
import jax.numpy as jnp
from jax.experimental import pallas as pl
from jax.experimental.pallas import tpu as pltpu

BN_EPS = 1e-5
LANE = 128   # all channel dims are padded to one full lane width


def gnn_kernel(x_ref, adj_ref, mask_ref,
               ws1_ref, b1_ref, g1_ref, be1_ref,
               ws2_ref, b2_ref, g2_ref, be2_ref,
               ws3_ref, b3_ref, g3_ref, be3_ref,
               wl1_ref, wl2_ref, wl3_ref, bl_ref,
               out_ref):
    B, N, _ = adj_ref.shape
    BN_rows, CP = x_ref.shape

    adj_f32 = adj_ref[...]                               # (B, N, N) f32
    adj_bf = adj_f32.astype(jnp.bfloat16)                # MXU operand
    mask2 = mask_ref[...]                                # (B*N, 1) f32

    # Mean-aggregation denominator: 1 / clamp(sum_j adj[b,i,j], 1).
    # deg is computed in f32 (exact); the reciprocal goes to the EUP slot.
    deg = jnp.maximum(jnp.sum(adj_f32, axis=-1, keepdims=True), 1.0)  # (B,N,1)
    inv_deg = pl.reciprocal(deg, approx=True)

    inv_rows = 1.0 / BN_rows

    def sage_bn(h, ws_ref, b_ref, g_ref, be_ref):
        # --- DenseSAGEConv (mean aggregation + fused lin_rel/lin_root) ------
        h_bf = h.astype(jnp.bfloat16)                    # (B*N, CP)
        agg = jnp.einsum('bij,bjc->bic', adj_bf, h_bf.reshape(B, N, CP),
                         preferred_element_type=jnp.float32)
        agg = (agg * inv_deg).reshape(BN_rows, CP)       # f32
        # fused matmul: [agg | h] @ [W_rel ; W_root]  (256-deep contraction)
        cat = jnp.concatenate([agg.astype(jnp.bfloat16), h_bf], axis=-1)
        out2 = (jnp.dot(cat, ws_ref[...], preferred_element_type=jnp.float32)
                + b_ref[...])                            # (B*N, CP) f32
        # mask padded nodes, then ReLU
        out2 = jnp.maximum(out2 * mask2, 0.0)
        # --- BatchNorm1d (training mode), one-pass statistics ---------------
        mean = jnp.sum(out2, axis=0, keepdims=True) * inv_rows
        msq = jnp.sum(out2 * out2, axis=0, keepdims=True) * inv_rows
        var = jnp.maximum(msq - mean * mean, 0.0)        # biased variance
        inv_std = jax.lax.rsqrt(var + BN_EPS)
        return (out2 - mean) * (inv_std * g_ref[...]) + be_ref[...]

    x1 = sage_bn(x_ref[...], ws1_ref, b1_ref, g1_ref, be1_ref)
    x2 = sage_bn(x1, ws2_ref, b2_ref, g2_ref, be2_ref)
    x3 = sage_bn(x2, ws3_ref, b3_ref, g3_ref, be3_ref)

    # Final Linear over concat([x1, x2, x3]) as a sum of three matmuls against
    # wrapper-split weight blocks (no VMEM concat), then ReLU.
    y = (jnp.dot(x1.astype(jnp.bfloat16), wl1_ref[...],
                 preferred_element_type=jnp.float32)
         + jnp.dot(x2.astype(jnp.bfloat16), wl2_ref[...],
                   preferred_element_type=jnp.float32)
         + jnp.dot(x3.astype(jnp.bfloat16), wl3_ref[...],
                   preferred_element_type=jnp.float32)
         + bl_ref[...])
    out_ref[...] = jnp.maximum(y, 0.0)                   # (B*N, CP) lane-dense


def _pad2(a, rows, cols):
    return jnp.pad(a, ((0, rows - a.shape[0]), (0, cols - a.shape[1])))


def gnn_forward(x, adj, mask, params, hid_c, out_c):
    B, N, in_c = x.shape
    assert N % 8 == 0, "node count must be a multiple of 8 for aligned reshapes"
    CP = LANE
    BN_rows = B * N

    # ---- wrapper-side layout plumbing: reshape / pad / fuse weights --------
    x2 = _pad2(x.reshape(BN_rows, in_c), BN_rows, CP)            # (B*N, 128)
    mask2 = mask.reshape(BN_rows, 1)

    def stacked(wr, wo):   # fused DenseSAGEConv weight: [W_rel ; W_root]
        return jnp.concatenate(
            [_pad2(wr, CP, CP), _pad2(wo, CP, CP)], axis=0).astype(jnp.bfloat16)

    def vec(v):            # (1, C) -> (1, 128) f32
        return _pad2(v, 1, CP)

    ws1 = stacked(params['w1r'], params['w1o'])
    ws2 = stacked(params['w2r'], params['w2o'])
    ws3 = stacked(params['w3r'], params['w3o'])

    wl = params['wl']                                    # (2H + O, O)
    wl1 = _pad2(wl[:hid_c], CP, CP).astype(jnp.bfloat16)
    wl2 = _pad2(wl[hid_c:2 * hid_c], CP, CP).astype(jnp.bfloat16)
    wl3 = _pad2(wl[2 * hid_c:], CP, CP).astype(jnp.bfloat16)

    args = (x2, adj, mask2,
            ws1, vec(params['b1']), vec(params['g1']), vec(params['be1']),
            ws2, vec(params['b2']), vec(params['g2']), vec(params['be2']),
            ws3, vec(params['b3']), vec(params['g3']), vec(params['be3']),
            wl1, wl2, wl3, vec(params['bl']))

    vmem = pl.BlockSpec(memory_space=pltpu.MemorySpace.VMEM)

    flops = int(3 * (2 * B * N * N * CP)              # neighbour aggregation x3
                + 3 * (2 * BN_rows * (2 * CP) * CP)   # fused SAGE linears  x3
                + 3 * (2 * BN_rows * CP * CP))        # final linear (3 blocks)
    bytes_accessed = int(sum(int(a.size) * a.dtype.itemsize for a in args)
                         + BN_rows * CP * 4)

    out2 = pl.pallas_call(
        gnn_kernel,
        out_shape=jax.ShapeDtypeStruct((BN_rows, CP), jnp.float32),
        in_specs=[vmem] * len(args),
        out_specs=vmem,
        compiler_params=pltpu.CompilerParams(vmem_limit_bytes=32 * 1024 * 1024),
        cost_estimate=pl.CostEstimate(flops=flops,
                                      transcendentals=int(B * N + 6 * CP),
                                      bytes_accessed=bytes_accessed),
    )(*args)

    return out2.reshape(B, N, CP)[:, :, :out_c]


def init_params(key, in_c, hid_c, out_c):
    keys = jax.random.split(key, 10)

    def lin_w(k, fin, fout):
        bound = 1.0 / (fin ** 0.5)
        return jax.random.uniform(k, (fin, fout), jnp.float32, -bound, bound)

    def lin_b(k, fin, fout):
        bound = 1.0 / (fin ** 0.5)
        return jax.random.uniform(k, (1, fout), jnp.float32, -bound, bound)

    p = {}
    # conv1 (DenseSAGEConv): lin_rel (no bias) + lin_root (bias)
    p['w1r'] = lin_w(keys[0], in_c, hid_c)
    p['w1o'] = lin_w(keys[1], in_c, hid_c)
    p['b1'] = lin_b(keys[2], in_c, hid_c)
    p['g1'] = jnp.ones((1, hid_c), jnp.float32)     # bn1 weight (PyTorch default)
    p['be1'] = jnp.zeros((1, hid_c), jnp.float32)   # bn1 bias
    # conv2
    p['w2r'] = lin_w(keys[3], hid_c, hid_c)
    p['w2o'] = lin_w(keys[4], hid_c, hid_c)
    p['b2'] = lin_b(keys[5], hid_c, hid_c)
    p['g2'] = jnp.ones((1, hid_c), jnp.float32)
    p['be2'] = jnp.zeros((1, hid_c), jnp.float32)
    # conv3
    p['w3r'] = lin_w(keys[6], hid_c, out_c)
    p['w3o'] = lin_w(keys[7], hid_c, out_c)
    p['b3'] = lin_b(keys[8], hid_c, out_c)
    p['g3'] = jnp.ones((1, out_c), jnp.float32)
    p['be3'] = jnp.zeros((1, out_c), jnp.float32)
    # final Linear(2*hidden + out, out)
    cat_c = 2 * hid_c + out_c
    kw, kb = jax.random.split(keys[9])
    p['wl'] = lin_w(kw, cat_c, out_c)
    p['bl'] = lin_b(kb, cat_c, out_c)
    return p


if __name__ == "__main__":
    B, N, IN_C, HID_C, OUT_C = 2, 8, 4, 32, 16

    key = jax.random.PRNGKey(0)
    kx, ka, kp = jax.random.split(key, 3)

    x = jax.random.normal(kx, (B, N, IN_C), jnp.float32)
    adj_raw = (jax.random.uniform(ka, (B, N, N)) > 0.5).astype(jnp.float32)
    adj = jnp.maximum(adj_raw, jnp.transpose(adj_raw, (0, 2, 1)))  # symmetric 0/1
    mask = jnp.ones((B, N), jnp.float32).at[1, N - 2:].set(0.0)    # pad 2 nodes

    params = init_params(kp, IN_C, HID_C, OUT_C)

    out = gnn_forward(x, adj, mask, params, HID_C, OUT_C)
    jax.block_until_ready(out)
    assert out.shape == (B, N, OUT_C)
    print("KERNEL_OK")
</pallas_src>

<mosaic_0001>
module attributes {stable_mosaic.version = 11 : i64} {
  func.func @gnn_kernel(%arg0: memref<16x128xf32, #tpu.memory_space<vmem>>, %arg1: memref<2x8x8xf32, #tpu.memory_space<vmem>>, %arg2: memref<16x1xf32, #tpu.memory_space<vmem>>, %arg3: memref<256x128xbf16, #tpu.memory_space<vmem>>, %arg4: memref<1x128xf32, #tpu.memory_space<vmem>>, %arg5: memref<1x128xf32, #tpu.memory_space<vmem>>, %arg6: memref<1x128xf32, #tpu.memory_space<vmem>>, %arg7: memref<256x128xbf16, #tpu.memory_space<vmem>>, %arg8: memref<1x128xf32, #tpu.memory_space<vmem>>, %arg9: memref<1x128xf32, #tpu.memory_space<vmem>>, %arg10: memref<1x128xf32, #tpu.memory_space<vmem>>, %arg11: memref<256x128xbf16, #tpu.memory_space<vmem>>, %arg12: memref<1x128xf32, #tpu.memory_space<vmem>>, %arg13: memref<1x128xf32, #tpu.memory_space<vmem>>, %arg14: memref<1x128xf32, #tpu.memory_space<vmem>>, %arg15: memref<128x128xbf16, #tpu.memory_space<vmem>>, %arg16: memref<128x128xbf16, #tpu.memory_space<vmem>>, %arg17: memref<128x128xbf16, #tpu.memory_space<vmem>>, %arg18: memref<1x128xf32, #tpu.memory_space<vmem>>, %arg19: memref<16x128xf32, #tpu.memory_space<vmem>>) attributes {dimension_semantics = [], scalar_prefetch = 0 : i64, scratch_operands = 0 : i64, tpu.core_type = #tpu.core_type<tc>} {
    %c0 = arith.constant 0 : index
    %c0_0 = arith.constant 0 : index
    %c0_1 = arith.constant 0 : index
    %0 = vector.load %arg1[%c0, %c0_0, %c0_1] : memref<2x8x8xf32, #tpu.memory_space<vmem>>, vector<2x8x8xf32>
    %1 = arith.truncf %0 : vector<2x8x8xf32> to vector<2x8x8xbf16>
    %c0_2 = arith.constant 0 : index
    %c0_3 = arith.constant 0 : index
    %2 = vector.load %arg2[%c0_2, %c0_3] : memref<16x1xf32, #tpu.memory_space<vmem>>, vector<16x1xf32>
    %cst = arith.constant dense<0.000000e+00> : vector<2x8xf32>
    %3 = vector.multi_reduction <add>, %0, %cst [2] : vector<2x8x8xf32> to vector<2x8xf32>
    %4 = vector.shape_cast %3 : vector<2x8xf32> to vector<2x8x1xf32>
    %cst_4 = arith.constant 1.000000e+00 : f32
    %5 = vector.broadcast %cst_4 : f32 to vector<2x8x1xf32>
    %6 = arith.maximumf %4, %5 : vector<2x8x1xf32>
    %7 = tpu.reciprocal %6 {approx = true} : vector<2x8x1xf32> -> vector<2x8x1xf32>
    %c0_5 = arith.constant 0 : index
    %c0_6 = arith.constant 0 : index
    %8 = vector.load %arg0[%c0_5, %c0_6] : memref<16x128xf32, #tpu.memory_space<vmem>>, vector<16x128xf32>
    %9 = arith.truncf %8 : vector<16x128xf32> to vector<16x128xbf16>
    %10 = vector.shape_cast %9 : vector<16x128xbf16> to vector<2x8x128xbf16>
    "tpu.trace_start"() <{level = 10 : i32, message = "bij,bjc->bic"}> : () -> ()
    %cst_7 = arith.constant dense<0.000000e+00> : vector<2x8x128xf32>
    %11 = tpu.matmul %1, %10, %cst_7 {dimension_numbers = #tpu.dot_dimension_numbers<[2], [1], [1], [2], [0, 0, 0, 1, 1, 2], [0], [0]>} : vector<2x8x8xbf16>, vector<2x8x128xbf16>, vector<2x8x128xf32> -> vector<2x8x128xf32>
    "tpu.trace_stop"() : () -> ()
    %12 = vector.broadcast %7 : vector<2x8x1xf32> to vector<2x8x128xf32>
    %13 = arith.mulf %11, %12 : vector<2x8x128xf32>
    %14 = vector.shape_cast %13 : vector<2x8x128xf32> to vector<16x128xf32>
    %15 = arith.truncf %14 : vector<16x128xf32> to vector<16x128xbf16>
    %16 = tpu.concatenate %15, %9 in 1 : vector<16x128xbf16>, vector<16x128xbf16> -> vector<16x256xbf16>
    %c0_8 = arith.constant 0 : index
    %c0_9 = arith.constant 0 : index
    %17 = vector.load %arg3[%c0_8, %c0_9] : memref<256x128xbf16, #tpu.memory_space<vmem>>, vector<256x128xbf16>
    %cst_10 = arith.constant dense<0.000000e+00> : vector<16x128xf32>
    %18 = tpu.matmul %16, %17, %cst_10 {dimension_numbers = #tpu.dot_dimension_numbers<[1], [0], [0], [1], [0, 0, 1, 1], [], []>} : vector<16x256xbf16>, vector<256x128xbf16>, vector<16x128xf32> -> vector<16x128xf32>
    %c0_11 = arith.constant 0 : index
    %c0_12 = arith.constant 0 : index
    %19 = vector.load %arg4[%c0_11, %c0_12] : memref<1x128xf32, #tpu.memory_space<vmem>>, vector<1x128xf32>
    %20 = vector.broadcast %19 : vector<1x128xf32> to vector<16x128xf32>
    %21 = arith.addf %18, %20 : vector<16x128xf32>
    %22 = vector.broadcast %2 : vector<16x1xf32> to vector<16x128xf32>
    %23 = arith.mulf %21, %22 : vector<16x128xf32>
    %cst_13 = arith.constant 0.000000e+00 : f32
    %24 = vector.broadcast %cst_13 : f32 to vector<16x128xf32>
    %25 = arith.maximumf %23, %24 : vector<16x128xf32>
    %cst_14 = arith.constant dense<0.000000e+00> : vector<128xf32>
    %26 = vector.multi_reduction <add>, %25, %cst_14 [0] : vector<16x128xf32> to vector<128xf32>
    %27 = vector.shape_cast %26 : vector<128xf32> to vector<1x128xf32>
    %cst_15 = arith.constant 6.250000e-02 : f32
    %28 = vector.broadcast %cst_15 : f32 to vector<1x128xf32>
    %29 = arith.mulf %27, %28 : vector<1x128xf32>
    %30 = arith.mulf %25, %25 : vector<16x128xf32>
    %cst_16 = arith.constant dense<0.000000e+00> : vector<128xf32>
    %31 = vector.multi_reduction <add>, %30, %cst_16 [0] : vector<16x128xf32> to vector<128xf32>
    %32 = vector.shape_cast %31 : vector<128xf32> to vector<1x128xf32>
    %cst_17 = arith.constant 6.250000e-02 : f32
    %33 = vector.broadcast %cst_17 : f32 to vector<1x128xf32>
    %34 = arith.mulf %32, %33 : vector<1x128xf32>
    %35 = arith.mulf %29, %29 : vector<1x128xf32>
    %36 = arith.subf %34, %35 : vector<1x128xf32>
    %cst_18 = arith.constant 0.000000e+00 : f32
    %37 = vector.broadcast %cst_18 : f32 to vector<1x128xf32>
    %38 = arith.maximumf %36, %37 : vector<1x128xf32>
    %cst_19 = arith.constant 9.99999974E-6 : f32
    %39 = vector.broadcast %cst_19 : f32 to vector<1x128xf32>
    %40 = arith.addf %38, %39 : vector<1x128xf32>
    %41 = math.rsqrt %40 : vector<1x128xf32>
    %42 = vector.broadcast %29 : vector<1x128xf32> to vector<16x128xf32>
    %43 = arith.subf %25, %42 : vector<16x128xf32>
    %c0_20 = arith.constant 0 : index
    %c0_21 = arith.constant 0 : index
    %44 = vector.load %arg5[%c0_20, %c0_21] : memref<1x128xf32, #tpu.memory_space<vmem>>, vector<1x128xf32>
    %45 = arith.mulf %41, %44 : vector<1x128xf32>
    %46 = vector.broadcast %45 : vector<1x128xf32> to vector<16x128xf32>
    %47 = arith.mulf %43, %46 : vector<16x128xf32>
    %c0_22 = arith.constant 0 : index
    %c0_23 = arith.constant 0 : index
    %48 = vector.load %arg6[%c0_22, %c0_23] : memref<1x128xf32, #tpu.memory_space<vmem>>, vector<1x128xf32>
    %49 = vector.broadcast %48 : vector<1x128xf32> to vector<16x128xf32>
    %50 = arith.addf %47, %49 : vector<16x128xf32>
    %51 = arith.truncf %50 : vector<16x128xf32> to vector<16x128xbf16>
    %52 = vector.shape_cast %51 : vector<16x128xbf16> to vector<2x8x128xbf16>
    "tpu.trace_start"() <{level = 10 : i32, message = "bij,bjc->bic"}> : () -> ()
    %cst_24 = arith.constant dense<0.000000e+00> : vector<2x8x128xf32>
    %53 = tpu.matmul %1, %52, %cst_24 {dimension_numbers = #tpu.dot_dimension_numbers<[2], [1], [1], [2], [0, 0, 0, 1, 1, 2], [0], [0]>} : vector<2x8x8xbf16>, vector<2x8x128xbf16>, vector<2x8x128xf32> -> vector<2x8x128xf32>
    "tpu.trace_stop"() : () -> ()
    %54 = vector.broadcast %7 : vector<2x8x1xf32> to vector<2x8x128xf32>
    %55 = arith.mulf %53, %54 : vector<2x8x128xf32>
    %56 = vector.shape_cast %55 : vector<2x8x128xf32> to vector<16x128xf32>
    %57 = arith.truncf %56 : vector<16x128xf32> to vector<16x128xbf16>
    %58 = tpu.concatenate %57, %51 in 1 : vector<16x128xbf16>, vector<16x128xbf16> -> vector<16x256xbf16>
    %c0_25 = arith.constant 0 : index
    %c0_26 = arith.constant 0 : index
    %59 = vector.load %arg7[%c0_25, %c0_26] : memref<256x128xbf16, #tpu.memory_space<vmem>>, vector<256x128xbf16>
    %cst_27 = arith.constant dense<0.000000e+00> : vector<16x128xf32>
    %60 = tpu.matmul %58, %59, %cst_27 {dimension_numbers = #tpu.dot_dimension_numbers<[1], [0], [0], [1], [0, 0, 1, 1], [], []>} : vector<16x256xbf16>, vector<256x128xbf16>, vector<16x128xf32> -> vector<16x128xf32>
    %c0_28 = arith.constant 0 : index
    %c0_29 = arith.constant 0 : index
    %61 = vector.load %arg8[%c0_28, %c0_29] : memref<1x128xf32, #tpu.memory_space<vmem>>, vector<1x128xf32>
    %62 = vector.broadcast %61 : vector<1x128xf32> to vector<16x128xf32>
    %63 = arith.addf %60, %62 : vector<16x128xf32>
    %64 = vector.broadcast %2 : vector<16x1xf32> to vector<16x128xf32>
    %65 = arith.mulf %63, %64 : vector<16x128xf32>
    %cst_30 = arith.constant 0.000000e+00 : f32
    %66 = vector.broadcast %cst_30 : f32 to vector<16x128xf32>
    %67 = arith.maximumf %65, %66 : vector<16x128xf32>
    %cst_31 = arith.constant dense<0.000000e+00> : vector<128xf32>
    %68 = vector.multi_reduction <add>, %67, %cst_31 [0] : vector<16x128xf32> to vector<128xf32>
    %69 = vector.shape_cast %68 : vector<128xf32> to vector<1x128xf32>
    %cst_32 = arith.constant 6.250000e-02 : f32
    %70 = vector.broadcast %cst_32 : f32 to vector<1x128xf32>
    %71 = arith.mulf %69, %70 : vector<1x128xf32>
    %72 = arith.mulf %67, %67 : vector<16x128xf32>
    %cst_33 = arith.constant dense<0.000000e+00> : vector<128xf32>
    %73 = vector.multi_reduction <add>, %72, %cst_33 [0] : vector<16x128xf32> to vector<128xf32>
    %74 = vector.shape_cast %73 : vector<128xf32> to vector<1x128xf32>
    %cst_34 = arith.constant 6.250000e-02 : f32
    %75 = vector.broadcast %cst_34 : f32 to vector<1x128xf32>
    %76 = arith.mulf %74, %75 : vector<1x128xf32>
    %77 = arith.mulf %71, %71 : vector<1x128xf32>
    %78 = arith.subf %76, %77 : vector<1x128xf32>
    %cst_35 = arith.constant 0.000000e+00 : f32
    %79 = vector.broadcast %cst_35 : f32 to vector<1x128xf32>
    %80 = arith.maximumf %78, %79 : vector<1x128xf32>
    %cst_36 = arith.constant 9.99999974E-6 : f32
    %81 = vector.broadcast %cst_36 : f32 to vector<1x128xf32>
    %82 = arith.addf %80, %81 : vector<1x128xf32>
    %83 = math.rsqrt %82 : vector<1x128xf32>
    %84 = vector.broadcast %71 : vector<1x128xf32> to vector<16x128xf32>
    %85 = arith.subf %67, %84 : vector<16x128xf32>
    %c0_37 = arith.constant 0 : index
    %c0_38 = arith.constant 0 : index
    %86 = vector.load %arg9[%c0_37, %c0_38] : memref<1x128xf32, #tpu.memory_space<vmem>>, vector<1x128xf32>
    %87 = arith.mulf %83, %86 : vector<1x128xf32>
    %88 = vector.broadcast %87 : vector<1x128xf32> to vector<16x128xf32>
    %89 = arith.mulf %85, %88 : vector<16x128xf32>
    %c0_39 = arith.constant 0 : index
    %c0_40 = arith.constant 0 : index
    %90 = vector.load %arg10[%c0_39, %c0_40] : memref<1x128xf32, #tpu.memory_space<vmem>>, vector<1x128xf32>
    %91 = vector.broadcast %90 : vector<1x128xf32> to vector<16x128xf32>
    %92 = arith.addf %89, %91 : vector<16x128xf32>
    %93 = arith.truncf %92 : vector<16x128xf32> to vector<16x128xbf16>
    %94 = vector.shape_cast %93 : vector<16x128xbf16> to vector<2x8x128xbf16>
    "tpu.trace_start"() <{level = 10 : i32, message = "bij,bjc->bic"}> : () -> ()
    %cst_41 = arith.constant dense<0.000000e+00> : vector<2x8x128xf32>
    %95 = tpu.matmul %1, %94, %cst_41 {dimension_numbers = #tpu.dot_dimension_numbers<[2], [1], [1], [2], [0, 0, 0, 1, 1, 2], [0], [0]>} : vector<2x8x8xbf16>, vector<2x8x128xbf16>, vector<2x8x128xf32> -> vector<2x8x128xf32>
    "tpu.trace_stop"() : () -> ()
    %96 = vector.broadcast %7 : vector<2x8x1xf32> to vector<2x8x128xf32>
    %97 = arith.mulf %95, %96 : vector<2x8x128xf32>
    %98 = vector.shape_cast %97 : vector<2x8x128xf32> to vector<16x128xf32>
    %99 = arith.truncf %98 : vector<16x128xf32> to vector<16x128xbf16>
    %100 = tpu.concatenate %99, %93 in 1 : vector<16x128xbf16>, vector<16x128xbf16> -> vector<16x256xbf16>
    %c0_42 = arith.constant 0 : index
    %c0_43 = arith.constant 0 : index
    %101 = vector.load %arg11[%c0_42, %c0_43] : memref<256x128xbf16, #tpu.memory_space<vmem>>, vector<256x128xbf16>
    %cst_44 = arith.constant dense<0.000000e+00> : vector<16x128xf32>
    %102 = tpu.matmul %100, %101, %cst_44 {dimension_numbers = #tpu.dot_dimension_numbers<[1], [0], [0], [1], [0, 0, 1, 1], [], []>} : vector<16x256xbf16>, vector<256x128xbf16>, vector<16x128xf32> -> vector<16x128xf32>
    %c0_45 = arith.constant 0 : index
    %c0_46 = arith.constant 0 : index
    %103 = vector.load %arg12[%c0_45, %c0_46] : memref<1x128xf32, #tpu.memory_space<vmem>>, vector<1x128xf32>
    %104 = vector.broadcast %103 : vector<1x128xf32> to vector<16x128xf32>
    %105 = arith.addf %102, %104 : vector<16x128xf32>
    %106 = vector.broadcast %2 : vector<16x1xf32> to vector<16x128xf32>
    %107 = arith.mulf %105, %106 : vector<16x128xf32>
    %cst_47 = arith.constant 0.000000e+00 : f32
    %108 = vector.broadcast %cst_47 : f32 to vector<16x128xf32>
    %109 = arith.maximumf %107, %108 : vector<16x128xf32>
    %cst_48 = arith.constant dense<0.000000e+00> : vector<128xf32>
    %110 = vector.multi_reduction <add>, %109, %cst_48 [0] : vector<16x128xf32> to vector<128xf32>
    %111 = vector.shape_cast %110 : vector<128xf32> to vector<1x128xf32>
    %cst_49 = arith.constant 6.250000e-02 : f32
    %112 = vector.broadcast %cst_49 : f32 to vector<1x128xf32>
    %113 = arith.mulf %111, %112 : vector<1x128xf32>
    %114 = arith.mulf %109, %109 : vector<16x128xf32>
    %cst_50 = arith.constant dense<0.000000e+00> : vector<128xf32>
    %115 = vector.multi_reduction <add>, %114, %cst_50 [0] : vector<16x128xf32> to vector<128xf32>
    %116 = vector.shape_cast %115 : vector<128xf32> to vector<1x128xf32>
    %cst_51 = arith.constant 6.250000e-02 : f32
    %117 = vector.broadcast %cst_51 : f32 to vector<1x128xf32>
    %118 = arith.mulf %116, %117 : vector<1x128xf32>
    %119 = arith.mulf %113, %113 : vector<1x128xf32>
    %120 = arith.subf %118, %119 : vector<1x128xf32>
    %cst_52 = arith.constant 0.000000e+00 : f32
    %121 = vector.broadcast %cst_52 : f32 to vector<1x128xf32>
    %122 = arith.maximumf %120, %121 : vector<1x128xf32>
    %cst_53 = arith.constant 9.99999974E-6 : f32
    %123 = vector.broadcast %cst_53 : f32 to vector<1x128xf32>
    %124 = arith.addf %122, %123 : vector<1x128xf32>
    %125 = math.rsqrt %124 : vector<1x128xf32>
    %126 = vector.broadcast %113 : vector<1x128xf32> to vector<16x128xf32>
    %127 = arith.subf %109, %126 : vector<16x128xf32>
    %c0_54 = arith.constant 0 : index
    %c0_55 = arith.constant 0 : index
    %128 = vector.load %arg13[%c0_54, %c0_55] : memref<1x128xf32, #tpu.memory_space<vmem>>, vector<1x128xf32>
    %129 = arith.mulf %125, %128 : vector<1x128xf32>
    %130 = vector.broadcast %129 : vector<1x128xf32> to vector<16x128xf32>
    %131 = arith.mulf %127, %130 : vector<16x128xf32>
    %c0_56 = arith.constant 0 : index
    %c0_57 = arith.constant 0 : index
    %132 = vector.load %arg14[%c0_56, %c0_57] : memref<1x128xf32, #tpu.memory_space<vmem>>, vector<1x128xf32>
    %133 = vector.broadcast %132 : vector<1x128xf32> to vector<16x128xf32>
    %134 = arith.addf %131, %133 : vector<16x128xf32>
    %135 = arith.truncf %50 : vector<16x128xf32> to vector<16x128xbf16>
    %c0_58 = arith.constant 0 : index
    %c0_59 = arith.constant 0 : index
    %136 = vector.load %arg15[%c0_58, %c0_59] : memref<128x128xbf16, #tpu.memory_space<vmem>>, vector<128x128xbf16>
    %cst_60 = arith.constant dense<0.000000e+00> : vector<16x128xf32>
    %137 = tpu.matmul %135, %136, %cst_60 {dimension_numbers = #tpu.dot_dimension_numbers<[1], [0], [0], [1], [0, 0, 1, 1], [], []>} : vector<16x128xbf16>, vector<128x128xbf16>, vector<16x128xf32> -> vector<16x128xf32>
    %138 = arith.truncf %92 : vector<16x128xf32> to vector<16x128xbf16>
    %c0_61 = arith.constant 0 : index
    %c0_62 = arith.constant 0 : index
    %139 = vector.load %arg16[%c0_61, %c0_62] : memref<128x128xbf16, #tpu.memory_space<vmem>>, vector<128x128xbf16>
    %cst_63 = arith.constant dense<0.000000e+00> : vector<16x128xf32>
    %140 = tpu.matmul %138, %139, %cst_63 {dimension_numbers = #tpu.dot_dimension_numbers<[1], [0], [0], [1], [0, 0, 1, 1], [], []>} : vector<16x128xbf16>, vector<128x128xbf16>, vector<16x128xf32> -> vector<16x128xf32>
    %141 = arith.addf %137, %140 : vector<16x128xf32>
    %142 = arith.truncf %134 : vector<16x128xf32> to vector<16x128xbf16>
    %c0_64 = arith.constant 0 : index
    %c0_65 = arith.constant 0 : index
    %143 = vector.load %arg17[%c0_64, %c0_65] : memref<128x128xbf16, #tpu.memory_space<vmem>>, vector<128x128xbf16>
    %cst_66 = arith.constant dense<0.000000e+00> : vector<16x128xf32>
    %144 = tpu.matmul %142, %143, %cst_66 {dimension_numbers = #tpu.dot_dimension_numbers<[1], [0], [0], [1], [0, 0, 1, 1], [], []>} : vector<16x128xbf16>, vector<128x128xbf16>, vector<16x128xf32> -> vector<16x128xf32>
    %145 = arith.addf %141, %144 : vector<16x128xf32>
    %c0_67 = arith.constant 0 : index
    %c0_68 = arith.constant 0 : index
    %146 = vector.load %arg18[%c0_67, %c0_68] : memref<1x128xf32, #tpu.memory_space<vmem>>, vector<1x128xf32>
    %147 = vector.broadcast %146 : vector<1x128xf32> to vector<16x128xf32>
    %148 = arith.addf %145, %147 : vector<16x128xf32>
    %cst_69 = arith.constant 0.000000e+00 : f32
    %149 = vector.broadcast %cst_69 : f32 to vector<16x128xf32>
    %150 = arith.maximumf %148, %149 : vector<16x128xf32>
    %c0_70 = arith.constant 0 : index
    %c0_71 = arith.constant 0 : index
    %151 = vector.load %arg19[%c0_70, %c0_71] : memref<16x128xf32, #tpu.memory_space<vmem>>, vector<16x128xf32>
    tpu.vector_store %arg19[%c0_70, %c0_71], %150 {strides = array<i32>} : memref<16x128xf32, #tpu.memory_space<vmem>>, vector<16x128xf32>,
    return
  }
}

</mosaic_0001>

<bundles_post_ra>
// kernel: tpu_custom_call.1
= control target key start
LH: loop header
LB: loop body
LE: loop exit
PB: predicated region body
PF: predicated region fallthrough
CT: control target
= control target key end

     0   :  { %s2482_s0 = inlined_call_operand.hbm [shape: f32[16,128], index: 0, kind: input, shape index: {}]   ;;  %s2483_s1 = inlined_call_operand.hbm [shape: f32[2,8,8], index: 1, kind: input, shape index: {}]   ;;  %s2484_s2 = inlined_call_operand.vmem [shape: f32[16,1], index: 2, kind: input, shape index: {}]   ;;  %s2485_s3 = inlined_call_operand.hbm [shape: bf16[256,128], index: 3, kind: input, shape index: {}]   ;;  %s2486_s4 = inlined_call_operand.vmem [shape: f32[1,128], index: 4, kind: input, shape index: {}]   ;;  %s2487_s5 = inlined_call_operand.vmem [shape: f32[1,128], index: 5, kind: input, shape index: {}]   ;;  %s2488_s6 = inlined_call_operand.vmem [shape: f32[1,128], index: 6, kind: input, shape index: {}]   ;;  %s2489_s7 = inlined_call_operand.hbm [shape: bf16[256,128], index: 7, kind: input, shape index: {}]   ;;  %s2490_s8 = inlined_call_operand.vmem [shape: f32[1,128], index: 8, kind: input, shape index: {}]   ;;  %s2491_s9 = inlined_call_operand.vmem [shape: f32[1,128], index: 9, kind: input, shape index: {}]   ;;  %s2492_s10 = inlined_call_operand.vmem [shape: f32[1,128], index: 10, kind: input, shape index: {}]   ;;  %s2493_s11 = inlined_call_operand.hbm [shape: bf16[256,128], index: 11, kind: input, shape index: {}]   ;;  %s2494_s12 = inlined_call_operand.vmem [shape: f32[1,128], index: 12, kind: input, shape index: {}]   ;;  %s2495_s13 = inlined_call_operand.vmem [shape: f32[1,128], index: 13, kind: input, shape index: {}]   ;;  %s2496_s14 = inlined_call_operand.vmem [shape: f32[1,128], index: 14, kind: input, shape index: {}]   ;;  %s2497_s15 = inlined_call_operand.vmem [shape: bf16[128,128], index: 15, kind: input, shape index: {}]   ;;  %s2498_s16 = inlined_call_operand.hbm [shape: bf16[128,128], index: 16, kind: input, shape index: {}]   ;;  %s2499_s17 = inlined_call_operand.hbm [shape: bf16[128,128], index: 17, kind: input, shape index: {}]   ;;  %s2500_s18 = inlined_call_operand.vmem [shape: f32[1,128], index: 18, kind: input, shape index: {}]   ;;  %s2501_s19 = inlined_call_operand.hbm [shape: f32[16,128], index: 19, kind: output, shape index: {}]  }
   0x1   :  { %2509 = sst [smem:[#allocation20_spill]] %s2482_s0 }
   0x2   :  { %2510 = sst [smem:[#allocation21_spill]] %s2483_s1 }
   0x3   :  { %2511 = sst [smem:[#allocation22_spill]] %s2484_s2 }
   0x4   :  { %2512 = sst [smem:[#allocation23_spill]] %s2485_s3 }
   0x5   :  { %2513 = sst [smem:[#allocation24_spill]] %s2500_s18 }
   0x6   :  { %2514 = sst [smem:[#allocation25_spill]] %s2501_s19 }
   0x7   :  { %24 = vsyncpa [#allocation3], 0 }
   0x8   :  { %25 = vsyncpa [#allocation6], 0 }
   0x9   :  { %26 = vsyncpa [#allocation9], 0 }
   0xa   :  { %27 = vsyncpa [#allocation12], 0 }
   0xb   :  { %28 = vsyncpa [#allocation4], 0  ;;  %s2080_s0 = smov [#allocation5]   ;;  %s2515_s1 = sld [smem:[#allocation21_spill]] }
   0xc   :  { %s46_s30 = sshll.u32 %s2080_s0, 4  ;;  %s47_s30 = int_to_ptr.vmem [resolvable:$true] %s46_s30 }
  0x11   :  { %s1894_s22 = scalar_lea.hbm %s2515_s1, 256 }
  0x12   :  { %p1895_p0 = scmp.ne.s32.totalorder %s2515_s1, %s1894_s22  ;;  %p1898_p1 = scmp.lt.u32.totalorder %s1894_s22, %s2515_s1 }
  0x14   :  { %p1900_p2 = pnand %p1898_p1, %p1895_p0 }
  0x16   :  { %1903 = shalt.err (!%p1900_p2)
}
  0x17   :  { %s1904_s3 = scalar_lea.vmem %s47_s30, 256  ;;  %p1909_p4 = scmp.lt.s32.totalorder %s47_s30, %s47_s30 }
  0x18   :  { %p1905_p3 = scmp.ne.s32.totalorder %s47_s30, %s1904_s3  ;;  %p1910_p5 = scmp.lt.s32.totalorder %s1904_s3, %s1904_s3 }
  0x1a   :  { %p1911_p6 = por %p1910_p5, %p1909_p4 }
  0x1c   :  { %p1912_p7 = pnand %p1911_p6, %p1905_p3 }
  0x1e   :  { %1915 = shalt.err (!%p1912_p7)
}
  0x1f   :  { %s2507_s26 = smov 128   ;;  %s2082_s27 = smov 8  }
  0x20   :  { %52 = dma.hbm_to_vmem [thread:$0]  %s2515_s1, 256, %s47_s30, [#allocation6], %s2507_s26, %s2507_s26, %s2082_s27  }
  0x21   :  { %s2083_s0 = smov [#allocation8]   ;;  %s2084_s21 = smov [#allocation11]  }
  0x22   :  { %s78_s20 = sshll.u32 %s2083_s0, 4  ;;  %s116_s22 = sshll.u32 %s2084_s21, 4  ;;  %s79_s20 = int_to_ptr.vmem [resolvable:$true] %s78_s20  ;;  %s117_s22 = int_to_ptr.vmem [resolvable:$true] %s116_s22 }
  0x23   :  { %s1916_s24 = scalar_lea.hbm %s2489_s7, 2048 }
  0x24   :  { %p1917_p8 = scmp.ne.s32.totalorder %s2489_s7, %s1916_s24  ;;  %p1920_p9 = scmp.lt.u32.totalorder %s1916_s24, %s2489_s7 }
  0x26   :  { %p1922_p10 = pnand %p1920_p9, %p1917_p8 }
  0x28   :  { %1925 = shalt.err (!%p1922_p10)
}
  0x29   :  { %s1926_s30 = scalar_lea.vmem %s79_s20, 2048  ;;  %p1931_p12 = scmp.lt.s32.totalorder %s79_s20, %s79_s20 }
  0x2a   :  { %p1927_p11 = scmp.ne.s32.totalorder %s79_s20, %s1926_s30  ;;  %p1932_p13 = scmp.lt.s32.totalorder %s1926_s30, %s1926_s30 }
  0x2c   :  { %p1933_p0 = por %p1932_p13, %p1931_p12 }
  0x2e   :  { %p1934_p1 = pnand %p1933_p0, %p1927_p11 }
  0x30   :  { %1937 = shalt.err (!%p1934_p1)
}
  0x31   :  { %s2085_s1 = smov 64   ;;  %s2086_s28 = smov 4  }
  0x32   :  { %84 = dma.hbm_to_vmem [thread:$0]  %s2489_s7, 2048, %s79_s20, [#allocation9], %s2085_s1, %s2085_s1, %s2086_s28  }
  0x33   :  { %s1938_s21 = scalar_lea.hbm %s2498_s16, 1024 }
  0x34   :  { %p1939_p2 = scmp.ne.s32.totalorder %s2498_s16, %s1938_s21  ;;  %p1942_p3 = scmp.lt.u32.totalorder %s1938_s21, %s2498_s16 }
  0x36   :  { %p1944_p4 = pnand %p1942_p3, %p1939_p2 }
  0x38   :  { %1947 = shalt.err (!%p1944_p4)
}
  0x39   :  { %s1948_s3 = scalar_lea.vmem %s117_s22, 1024  ;;  %p1953_p6 = scmp.lt.s32.totalorder %s117_s22, %s117_s22 }
  0x3a   :  { %p1949_p5 = scmp.ne.s32.totalorder %s117_s22, %s1948_s3  ;;  %p1954_p7 = scmp.lt.s32.totalorder %s1948_s3, %s1948_s3 }
  0x3c   :  { %p1955_p8 = por %p1954_p7, %p1953_p6 }
  0x3e   :  { %p1956_p9 = pnand %p1955_p8, %p1949_p5 }
  0x40   :  { %1959 = shalt.err (!%p1956_p9)
}
  0x41   :  { %122 = dma.hbm_to_vmem [thread:$0]  %s2498_s16, 1024, %s117_s22, [#allocation12], %s2085_s1, %s2085_s1, %s2086_s28  }
  0x42   :  { %s2087_s30 = smov [#allocation2]   ;;  %s2088_s0 = smov [#allocation7]  }
  0x43   :  { %s34_s29 = sshll.u32 %s2087_s30, 4  ;;  %s60_s18 = sshll.u32 %s2088_s0, 4  ;;  %s35_s29 = int_to_ptr.vmem [resolvable:$true] %s34_s29  ;;  %s61_s18 = int_to_ptr.vmem [resolvable:$true] %s60_s18 }
  0x44   :  { %s2516_s2 = sld [smem:[#allocation20_spill]] }
  0x4a   :  { %s1960_s23 = scalar_lea.hbm %s2516_s2, 256 }
  0x4b   :  { %p1961_p10 = scmp.ne.s32.totalorder %s2516_s2, %s1960_s23  ;;  %p1964_p11 = scmp.lt.u32.totalorder %s1960_s23, %s2516_s2 }
  0x4d   :  { %p1966_p12 = pnand %p1964_p11, %p1961_p10 }
  0x4f   :  { %1969 = shalt.err (!%p1966_p12)
}
  0x50   :  { %s1970_s16 = scalar_lea.vmem %s35_s29, 256  ;;  %p1975_p0 = scmp.lt.s32.totalorder %s35_s29, %s35_s29 }
  0x51   :  { %p1971_p13 = scmp.ne.s32.totalorder %s35_s29, %s1970_s16  ;;  %p1976_p1 = scmp.lt.s32.totalorder %s1970_s16, %s1970_s16 }
  0x53   :  { %p1977_p2 = por %p1976_p1, %p1975_p0 }
  0x55   :  { %p1978_p3 = pnand %p1977_p2, %p1971_p13 }
  0x57   :  { %1981 = shalt.err (!%p1978_p3)
}
  0x58   :  { %s2517_s22 = smov 128   ;;  %s2518_s0 = sld [smem:[#allocation23_spill]] }
  0x59   :  { %40 = dma.hbm_to_vmem [thread:$0]  %s2516_s2, 256, %s35_s29, [#allocation3], %s2517_s22, %s2517_s22, %s2082_s27  }
  0x5e   :  { %s1982_s19 = scalar_lea.hbm %s2518_s0, 2048 }
  0x5f   :  { %p1983_p4 = scmp.ne.s32.totalorder %s2518_s0, %s1982_s19  ;;  %p1986_p5 = scmp.lt.u32.totalorder %s1982_s19, %s2518_s0 }
  0x61   :  { %p1988_p6 = pnand %p1986_p5, %p1983_p4 }
  0x63   :  { %1991 = shalt.err (!%p1988_p6)
}
  0x64   :  { %s1992_s3 = scalar_lea.vmem %s61_s18, 2048  ;;  %p1997_p8 = scmp.lt.s32.totalorder %s61_s18, %s61_s18 }
  0x65   :  { %p1993_p7 = scmp.ne.s32.totalorder %s61_s18, %s1992_s3  ;;  %p1998_p9 = scmp.lt.s32.totalorder %s1992_s3, %s1992_s3 }
  0x67   :  { %p1999_p10 = por %p1998_p9, %p1997_p8 }
  0x69   :  { %p2000_p11 = pnand %p1999_p10, %p1993_p7 }
  0x6b   :  { %2003 = shalt.err (!%p2000_p11)
}
  0x6c   :  { %66 = dma.hbm_to_vmem [thread:$0]  %s2518_s0, 2048, %s61_s18, [#allocation6], %s2085_s1, %s2085_s1, %s2086_s28  }
  0x6d   :  { %s2089_s16 = smov [#allocation10]   ;;  %s2090_s20 = smov [#allocation13]  }
  0x6e   :  { %s96_s7 = sshll.u32 %s2089_s16, 4  ;;  %s128_s30 = sshll.u32 %s2090_s20, 4  ;;  %s97_s7 = int_to_ptr.vmem [resolvable:$true] %s96_s7  ;;  %s129_s30 = int_to_ptr.vmem [resolvable:$true] %s128_s30 }
  0x6f   :  { %s2004_s21 = scalar_lea.hbm %s2493_s11, 2048 }
  0x70   :  { %p2005_p12 = scmp.ne.s32.totalorder %s2493_s11, %s2004_s21  ;;  %p2008_p13 = scmp.lt.u32.totalorder %s2004_s21, %s2493_s11 }
  0x72   :  { %p2010_p0 = pnand %p2008_p13, %p2005_p12 }
  0x74   :  { %2013 = shalt.err (!%p2010_p0)
}
  0x75   :  { %s2014_s18 = scalar_lea.vmem %s97_s7, 2048  ;;  %p2019_p2 = scmp.lt.s32.totalorder %s97_s7, %s97_s7 }
  0x76   :  { %p2015_p1 = scmp.ne.s32.totalorder %s97_s7, %s2014_s18  ;;  %p2020_p3 = scmp.lt.s32.totalorder %s2014_s18, %s2014_s18 }
  0x78   :  { %p2021_p4 = por %p2020_p3, %p2019_p2 }
  0x7a   :  { %p2022_p5 = pnand %p2021_p4, %p2015_p1 }
  0x7c   :  { %2025 = shalt.err (!%p2022_p5)
}
  0x7d   :  { %102 = dma.hbm_to_vmem [thread:$0]  %s2493_s11, 2048, %s97_s7, [#allocation9], %s2085_s1, %s2085_s1, %s2086_s28  }
  0x7e   :  { %s2026_s20 = scalar_lea.hbm %s2499_s17, 1024 }
  0x7f   :  { %p2027_p6 = scmp.ne.s32.totalorder %s2499_s17, %s2026_s20  ;;  %p2030_p7 = scmp.lt.u32.totalorder %s2026_s20, %s2499_s17 }
  0x81   :  { %p2032_p8 = pnand %p2030_p7, %p2027_p6 }
  0x83   :  { %2035 = shalt.err (!%p2032_p8)
}
  0x84   :  { %s2036_s24 = scalar_lea.vmem %s129_s30, 1024  ;;  %p2041_p10 = scmp.lt.s32.totalorder %s129_s30, %s129_s30 }
  0x85   :  { %p2037_p9 = scmp.ne.s32.totalorder %s129_s30, %s2036_s24  ;;  %p2042_p11 = scmp.lt.s32.totalorder %s2036_s24, %s2036_s24 }
  0x87   :  { %p2043_p12 = por %p2042_p11, %p2041_p10 }
  0x89   :  { %p2044_p13 = pnand %p2043_p12, %p2037_p9 }
  0x8b   :  { %2047 = shalt.err (!%p2044_p13)
}
  0x8c   :  { %134 = dma.hbm_to_vmem [thread:$0]  %s2499_s17, 1024, %s129_s30, [#allocation12], %s2085_s1, %s2085_s1, %s2086_s28  }
  0x8d   :  { %2070 = dma.done.wait [#allocation3], 256  }
  0x8e   :  { %2071 = vsyncadd [#allocation3], 4294967040 }
  0x8f   :  { %2072 = dma.done.wait [#allocation6], 2304  }
  0x90   :  { %2073 = vsyncadd [#allocation6], 4294964992 }
  0x91   :  { %2074 = dma.done.wait [#allocation9], 4096  }
  0x92   :  { %2075 = vsyncadd [#allocation9], 4294963200 }
  0x93   :  { %2076 = dma.done.wait [#allocation12], 2048  }
  0x94   :  { %2077 = vsyncadd [#allocation12], 4294965248  ;;  %v2091_v0 = vmov 0.0   ;;  %vm2092_vm0 = vmmov 0   ;;  %v176_v1 = vld [vmem:[#allocation2] sm:$0xff]  ;;  %vm187_vm1 = vcmask 1043456  }
  0x95   :  { %1699 = vmatprep.subr.bf16.mxu0 %v2091_v0  ;;  %1705 = vmatprep.subr.bf16.mxu1 %v2091_v0  ;;  %v177_v2 = vld [vmem:[#allocation2 + $0x8] sm:$0xff]  ;;  %v159_v3 = vld [vmem:[#allocation5] sm:$0xff]  ;;  %vm165_vm2 = vcmask 64512   ;;  %v1588_v4 = vpack.c.bf16 %v176_v1, %v176_v1  ;;  %v160_v6 = vld [vmem:[#allocation5 + $0x8] sm:$0xff]  ;;  %s2519_s28 = sld [smem:[#allocation22_spill]]  ;;  %v2093_v31 = vmov 0  }
  0x96   :  { %1701 = vmatprep.mubr.msk.bf16.mxu0 %vm2092_vm0, %v2091_v0  ;;  %1707 = vmatprep.mubr.msk.bf16.mxu1 %vm2092_vm0, %v2091_v0  ;;  %v1589_v5 = vpack.c.bf16 %v177_v2, %v177_v2  ;;  %v166_v7 = vsel %vm165_vm2, %v159_v3, 0.0  ;;  %v2307_v8 = vpack.c.bf16 %v159_v3, %v159_v3  ;;  %v1812_v9 = vld [vmem:[#allocation7 + $0x40] sm:$0xff]   ;;  %v2311_v12 = vpack.c.bf16 %v160_v6, %v160_v6  ;;  %v1814_v15 = vld [vmem:[#allocation7 + $0x48] sm:$0xff]   ;;  %v1816_v17 = vld [vmem:[#allocation7 + $0x50] sm:$0xff]   ;;  %s2520_s16 = sld [smem:[#allocation24_spill]] }
  0x97   :  { %167 = vadd.xlane.f32.xlu0 %v166_v7  ;;  %v189_v10 = vsel %vm187_vm1, %v1588_v4, 0  ;;  %v169_v13 = vsel %vm165_vm2, %v160_v6, 0.0  ;;  %v1813_v14 = vld [vmem:[#allocation7] sm:$0xff]   ;;  %v1815_v16 = vld [vmem:[#allocation7 + $0x8] sm:$0xff]   ;;  %v1817_v18 = vld [vmem:[#allocation7 + $0x10] sm:$0xff]   ;;  %v178_v29 = vpack.c.bf16 %v177_v2, %v176_v1  ;;  %1810 = vset.pattern.permute.xlu1 %v2093_v31 }
  0x98   :  { %v235_v11 = vsel %vm187_vm1, %v1589_v5, 0  ;;  %1700 = vmatpush3.bf16.msra.mxu0 %v189_v10  ;;  %v1818_v19 = vld [vmem:[#allocation7 + $0x58] sm:$0xff]   ;;  %v1820_v21 = vld [vmem:[#allocation7 + $0x60] sm:$0xff]   ;;  %v1822_v23 = vld [vmem:[#allocation7 + $0x68] sm:$0xff]   ;;  %1811 = vset.pattern.permute.xlu0 %v2093_v31 }
  0x99   :  { %1706 = vmatpush3.bf16.msra.mxu1 %v235_v11  ;;  %1598 = vmatprep.subr.bf16.mxu0 %v1812_v9  ;;  %v1819_v20 = vld [vmem:[#allocation7 + $0x18] sm:$0xff]   ;;  %v1821_v22 = vld [vmem:[#allocation7 + $0x20] sm:$0xff]   ;;  %v1823_v24 = vld [vmem:[#allocation7 + $0x28] sm:$0xff]  }
  0x9a   :  { %1711 = vmatprep.subr.bf16.mxu1 %v2091_v0  ;;  %v1824_v25 = vld [vmem:[#allocation7 + $0x70] sm:$0xff]   ;;  %v1826_v27 = vld [vmem:[#allocation7 + $0x78] sm:$0xff]   ;;  %v1501_v52 = vld [vmem:[%s2486_s4] ss:$0 sm:$0xff] }
  0x9b   :  { %170 = vadd.xlane.f32.xlu0 %v169_v13  ;;  %1702 = vmatmul.mubr.msk.bf16.vlgmr.msra.gmra.mrb[0].mxu0 %vm165_vm2, %v2307_v8  ;;  %v1825_v26 = vld [vmem:[#allocation7 + $0x30] sm:$0xff]   ;;  %v1827_v28 = vld [vmem:[#allocation7 + $0x38] sm:$0xff]   ;;  %v163_v30 = vld [vmem:[%s2519_s28] sm:$0xff] }
  0x9c   :  { %1708 = vmatmul.mubr.msk.bf16.vlgmr.msra.gmra.mrb[0].mxu1 %vm165_vm2, %v2311_v12  ;;  %1599 = vmatpush3.bf16.msra.mxu0 %v1813_v14  ;;  %v164_v32 = vld [vmem:[%s2519_s28 + $0x8] sm:$0xff] }
  0x9d   :  { %1713 = vmatprep.mubr.msk.bf16.mxu1 %vm2092_vm0, %v2091_v0  ;;  %1600 = vmatprep.subr.bf16.mxu0 %v1814_v15 }
  0x9e   :  { %447 = vmatprep.mubr.bf16.mxu0 %v178_v29  ;;  %458 = vperm.xlu1 %1810, %v163_v30   ;;  %v495_v30 = vld [vmem:[%s2487_s5] sm:$0x1] }
  0xa0   :  { %1601 = vmatpush3.bf16.msra.mxu0 %v1815_v16 }
  0xa1   :  { %1602 = vmatprep.subr.bf16.mxu0 %v1816_v17 }
  0xa2   :  { %463 = vperm.xlu1 %1810, %v164_v32  }
  0xa4   :  { %1603 = vmatpush3.bf16.msra.mxu0 %v1817_v18 }
  0xa5   :  { %1604 = vmatprep.subr.bf16.mxu0 %v1818_v19 }
  0xa8   :  { %1605 = vmatpush3.bf16.msra.mxu0 %v1819_v20 }
  0xa9   :  { %1606 = vmatprep.subr.bf16.mxu0 %v1820_v21 }
  0xac   :  { %1607 = vmatpush3.bf16.msra.mxu0 %v1821_v22 }
  0xad   :  { %1608 = vmatprep.subr.bf16.mxu0 %v1822_v23 }
  0xb0   :  { %1609 = vmatpush3.bf16.msra.mxu0 %v1823_v24 }
  0xb1   :  { %1610 = vmatprep.subr.bf16.mxu0 %v1824_v25 }
  0xb4   :  { %1611 = vmatpush3.bf16.msra.mxu0 %v1825_v26 }
  0xb5   :  { %1612 = vmatprep.subr.bf16.mxu0 %v1826_v27 }
  0xb8   :  { %1613 = vmatpush3.bf16.msra.mxu0 %v1827_v28  ;;  %v497_v28 = vlaneseq }
  0xb9   :  { %1723 = vmatprep.subr.bf16.mxu0 %v2091_v0 }
  0xba   :  { %v498_v29 = vshrl.u32 %v497_v28, 7 }
  0xbc   :  { %v2348_v31 = vsub.s32 0, %v498_v29 }
 0x11d   :  { %v2336_v51 = vpop.permute.xlu1 %458 }
 0x121   :  { %v2342_v61 = vpop.permute.xlu1 %463 }
 0x124   :  { %v168_v33 = vpop.xlane.xlu0 %167 }
 0x125   :  { %v172_v36 = vmax.f32 %v168_v33, 1.0 }
 0x128   :  { %v171_v34 = vpop.xlane.xlu0 %170 }
 0x129   :  { %v173_v35 = vmax.f32 %v171_v34, 1.0 }
 0x12b   :  { %1884 = vrcp.f32 %v173_v35  ;;  %v1518_v35 = vld [vmem:[%s2488_s6] ss:$0 sm:$0xff] }
 0x12c   :  { %1886 = vrcp.f32 %v172_v36 }
 0x135   :  { %v2328_v37 = vpop.eup %1884 }
 0x136   :  { %v2330_v38 = vpop.eup %1886 }
 0x16e   :  { %v225_v39 = vpop.f32.mrb[0].mxu0 }
 0x16f   :  { %v271_v40 = vpop.f32.mrb[0].mxu1  ;;  %v277_v41 = vmul.f32 %v2330_v38, %v225_v39  ;;  %v1703_v43 = vpop.f32.mrb[1].mxu0 }
 0x170   :  { %v278_v42 = vmul.f32 %v2328_v37, %v271_v40  ;;  %v1709_v44 = vpop.f32.mrb[1].mxu1  ;;  %v228_v45 = vpop.f32.mrb[2].mxu0 }
 0x171   :  { %v274_v46 = vpop.f32.mrb[2].mxu1  ;;  %v1704_v48 = vpop.f32.mrb[3].mxu0 }
 0x172   :  { %v279_v47 = vpack.c.bf16 %v278_v42, %v277_v41  ;;  %v1710_v49 = vpop.f32.mrb[3].mxu1  ;;  %v1828_v46 = vld [vmem:[#allocation8 + $0x40] sm:$0xff]  }
 0x173   :  { %v1829_v48 = vld [vmem:[#allocation8] sm:$0xff]   ;;  %v1830_v49 = vld [vmem:[#allocation8 + $0x48] sm:$0xff]  }
 0x174   :  { %448 = vmatmul.mubr.bf16.vlgmr.msra.gmra.mrb[4].mxu0 %v279_v47 }
 0x175   :  { %1725 = vmatprep.mubr.msk.bf16.mxu0 %vm2092_vm0, %v2091_v0 }
 0x247   :  { %v1614_v50 = vpop.f32.mrb[4].mxu0 }
 0x248   :  { %v1615_v53 = vpop.f32.mrb[5].mxu0 }
 0x249   :  { %v1616_v54 = vadd.f32 %v1615_v53, %v1614_v50  ;;  %v1617_v55 = vpop.f32.mrb[6].mxu0  ;;  %v1831_v50 = vld [vmem:[#allocation8 + $0x8] sm:$0xff]   ;;  %v1833_v53 = vld [vmem:[#allocation8 + $0x10] sm:$0xff]  }
 0x24a   :  { %v1618_v56 = vpop.f32.mrb[7].mxu0 }
 0x24b   :  { %v450_v57 = vadd.f32 %v1616_v54, %v1501_v52  ;;  %v1619_v58 = vadd.f32 %v1618_v56, %v1617_v55  ;;  %v1834_v54 = vld [vmem:[#allocation8 + $0x58] sm:$0xff]   ;;  %v1836_v56 = vld [vmem:[#allocation8 + $0x60] sm:$0xff]  }
 0x24c   :  { %v1835_v55 = vld [vmem:[#allocation8 + $0x18] sm:$0xff]  }
 0x24d   :  { %v466_v59 = vmul.f32 %v2336_v51, %v450_v57  ;;  %v453_v60 = vadd.f32 %v1619_v58, %v1501_v52  ;;  %v1832_v52 = vld [vmem:[#allocation8 + $0x50] sm:$0xff]   ;;  %v1837_v57 = vld [vmem:[#allocation8 + $0x20] sm:$0xff]   ;;  %v1838_v58 = vld [vmem:[#allocation8 + $0x68] sm:$0xff]  }
 0x24f   :  { %v468_v62 = vmax.f32 %v466_v59, 0.0  ;;  %v467_v63 = vmul.f32 %v2342_v61, %v453_v60  ;;  %v1839_v59 = vld [vmem:[#allocation8 + $0x28] sm:$0xff]   ;;  %v1840_v60 = vld [vmem:[#allocation8 + $0x70] sm:$0xff]  }
 0x251   :  { %v469_v1 = vmax.f32 %v467_v63, 0.0  ;;  %v478_v2 = vmul.f32 %v468_v62, %v468_v62  ;;  %v1842_v63 = vld [vmem:[#allocation8 + $0x78] sm:$0xff]  }
 0x253   :  { %v470_v3 = vadd.f32 %v469_v1, %v468_v62  ;;  %v479_v4 = vmul.f32 %v469_v1, %v469_v1 }
 0x255   :  { %v471_v5 = vrot.slane %v470_v3, 4  ;;  %v480_v6 = vadd.f32 %v479_v4, %v478_v2 }
 0x257   :  { %v472_v7 = vadd.f32 %v471_v5, %v470_v3  ;;  %v481_v9 = vrot.slane %v480_v6, 4 }
 0x259   :  { %v473_v10 = vrot.slane %v472_v7, 2  ;;  %v482_v11 = vadd.f32 %v481_v9, %v480_v6 }
 0x25b   :  { %v474_v13 = vadd.f32 %v473_v10, %v472_v7  ;;  %v483_v14 = vrot.slane %v482_v11, 2 }
 0x25d   :  { %v475_v15 = vrot.slane %v474_v13, 1  ;;  %v484_v16 = vadd.f32 %v483_v14, %v482_v11 }
 0x25f   :  { %v476_v17 = vadd.f32 %v475_v15, %v474_v13  ;;  %v485_v18 = vrot.slane %v484_v16, 1  ;;  %v1844_v15 = vld [vmem:[#allocation11] sm:$0xff]  }
 0x261   :  { %v477_v19 = vmul.f32 0.0625, %v476_v17  ;;  %v486_v20 = vadd.f32 %v485_v18, %v484_v16  ;;  %v1845_v16 = vld [vmem:[#allocation11 + $0x8] sm:$0xff]   ;;  %v1846_v17 = vld [vmem:[#allocation11 + $0x10] sm:$0xff]   ;;  %v1847_v18 = vld [vmem:[#allocation11 + $0x18] sm:$0xff]  }
 0x263   :  { %v487_v21 = vmul.f32 0.0625, %v486_v20  ;;  %v488_v22 = vmul.f32 %v477_v19, %v477_v19  ;;  %v494_v23 = vsub.f32 %v469_v1, %v477_v19  ;;  %v493_v24 = vsub.f32 %v468_v62, %v477_v19  ;;  %v1841_v62 = vld [vmem:[#allocation8 + $0x30] sm:$0xff]   ;;  %v1843_v1 = vld [vmem:[#allocation8 + $0x38] sm:$0xff]   ;;  %v1848_v19 = vld [vmem:[#allocation11 + $0x20] sm:$0xff]  }
 0x264   :  { %v1849_v20 = vld [vmem:[#allocation11 + $0x28] sm:$0xff]  }
 0x265   :  { %v489_v25 = vsub.f32 %v487_v21, %v488_v22  ;;  %v1850_v21 = vld [vmem:[#allocation11 + $0x30] sm:$0xff]   ;;  %v1851_v22 = vld [vmem:[#allocation11 + $0x38] sm:$0xff]  }
 0x267   :  { %v490_v26 = vmax.f32 %v489_v25, 0.0 }
 0x269   :  { %v491_v27 = vadd.f32 1e-05, %v490_v26 }
 0x26b   :  { %1888 = vrsqrt.f32 %v491_v27 }
 0x275   :  { %v1889_v32 = vpop.eup %1888 }
 0x276   :  { %v496_v33 = vmul.f32 %v1889_v32, %v495_v30 }
 0x278   :  { %v500_v34 = vrot.slane %v496_v33, %v2348_v31 }
 0x27a   :  { %v501_v36 = vmul.f32 %v500_v34, %v493_v24  ;;  %v502_v39 = vmul.f32 %v500_v34, %v494_v23  ;;  %v1523_v24 = vld [vmem:[%s2490_s8] ss:$0 sm:$0xff] }
 0x27c   :  { %v510_v40 = vadd.f32 %v1518_v35, %v501_v36  ;;  %v511_v41 = vadd.f32 %v1518_v35, %v502_v39 }
 0x27e   :  { %v1590_v42 = vpack.c.bf16 %v510_v40, %v510_v40  ;;  %v2354_v43 = vpack.c.bf16 %v511_v41, %v510_v40  ;;  %v1591_v45 = vpack.c.bf16 %v511_v41, %v511_v41 }
 0x280   :  { %v519_v44 = vsel %vm187_vm1, %v1590_v42, 0  ;;  %v562_v47 = vsel %vm187_vm1, %v1591_v45, 0 }
 0x281   :  { %1712 = vmatpush3.bf16.msra.mxu1 %v519_v44 }
 0x282   :  { %1717 = vmatprep.subr.bf16.mxu1 %v2091_v0 }
 0x284   :  { %1714 = vmatmul.mubr.msk.bf16.vlgmr.msra.gmra.mrb[4].mxu1 %vm165_vm2, %v2307_v8 }
 0x285   :  { %1718 = vmatpush3.bf16.msra.mxu1 %v562_v47  ;;  %1719 = vmatprep.mubr.msk.bf16.mxu1 %vm2092_vm0, %v2091_v0 }
 0x286   :  { %1624 = vmatprep.subr.bf16.mxu1 %v1828_v46 }
 0x28c   :  { %1720 = vmatmul.mubr.msk.bf16.vlgmr.msra.gmra.mrb[8].mxu1 %vm165_vm2, %v2311_v12 }
 0x28d   :  { %774 = vmatprep.mubr.bf16.mxu1 %v2354_v43  ;;  %1625 = vmatpush3.bf16.msra.mxu1 %v1829_v48 }
 0x28e   :  { %1626 = vmatprep.subr.bf16.mxu1 %v1830_v49 }
 0x291   :  { %1627 = vmatpush3.bf16.msra.mxu1 %v1831_v50 }
 0x292   :  { %1628 = vmatprep.subr.bf16.mxu1 %v1832_v52 }
 0x295   :  { %1629 = vmatpush3.bf16.msra.mxu1 %v1833_v53 }
 0x296   :  { %1630 = vmatprep.subr.bf16.mxu1 %v1834_v54 }
 0x299   :  { %1631 = vmatpush3.bf16.msra.mxu1 %v1835_v55 }
 0x29a   :  { %1632 = vmatprep.subr.bf16.mxu1 %v1836_v56 }
 0x29d   :  { %1633 = vmatpush3.bf16.msra.mxu1 %v1837_v57 }
 0x29e   :  { %1634 = vmatprep.subr.bf16.mxu1 %v1838_v58 }
 0x2a1   :  { %1635 = vmatpush3.bf16.msra.mxu1 %v1839_v59 }
 0x2a2   :  { %1636 = vmatprep.subr.bf16.mxu1 %v1840_v60 }
 0x2a5   :  { %1637 = vmatpush3.bf16.msra.mxu1 %v1841_v62 }
 0x2a6   :  { %1638 = vmatprep.subr.bf16.mxu1 %v1842_v63 }
 0x2a9   :  { %1639 = vmatpush3.bf16.msra.mxu1 %v1843_v1 }
 0x2aa   :  { %1735 = vmatprep.subr.bf16.mxu1 %v2091_v0 }
 0x357   :  { %v555_v2 = vpop.f32.mrb[4].mxu1 }
 0x358   :  { %v1715_v3 = vpop.f32.mrb[5].mxu1  ;;  %v604_v7 = vmul.f32 %v2330_v38, %v555_v2 }
 0x359   :  { %v558_v4 = vpop.f32.mrb[6].mxu1  ;;  %v812_v3 = vld [vmem:[%s2491_s9] sm:$0x1] }
 0x35a   :  { %v1716_v5 = vpop.f32.mrb[7].mxu1 }
 0x35f   :  { %v598_v6 = vpop.f32.mrb[8].mxu1 }
 0x360   :  { %v605_v9 = vmul.f32 %v2328_v37, %v598_v6  ;;  %v1721_v10 = vpop.f32.mrb[9].mxu1 }
 0x361   :  { %v601_v11 = vpop.f32.mrb[10].mxu1 }
 0x362   :  { %v606_v13 = vpack.c.bf16 %v605_v9, %v604_v7  ;;  %v1722_v14 = vpop.f32.mrb[11].mxu1  ;;  %v1540_v7 = vld [vmem:[%s2492_s10] ss:$0 sm:$0xff] }
 0x364   :  { %775 = vmatmul.mubr.bf16.vlgmr.msra.gmra.mrb[12].mxu1 %v606_v13 }
 0x365   :  { %1751 = vmatprep.mubr.msk.bf16.mxu1 %vm2092_vm0, %v2091_v0  ;;  %1736 = vmatpush3.bf16.msra.mxu1 %v1844_v15 }
 0x366   :  { %1737 = vmatprep.subr.bf16.mxu1 %v2091_v0 }
 0x369   :  { %1738 = vmatpush3.bf16.msra.mxu1 %v1845_v16 }
 0x36a   :  { %1739 = vmatprep.subr.bf16.mxu1 %v2091_v0 }
 0x36d   :  { %1740 = vmatpush3.bf16.msra.mxu1 %v1846_v17 }
 0x36e   :  { %1741 = vmatprep.subr.bf16.mxu1 %v2091_v0 }
 0x371   :  { %1742 = vmatpush3.bf16.msra.mxu1 %v1847_v18  ;;  %v1852_v18 = vld [vmem:[#allocation10 + $0x40] sm:$0xff]  }
 0x372   :  { %1743 = vmatprep.subr.bf16.mxu1 %v2091_v0 }
 0x375   :  { %1744 = vmatpush3.bf16.msra.mxu1 %v1848_v19 }
 0x376   :  { %1745 = vmatprep.subr.bf16.mxu1 %v2091_v0 }
 0x379   :  { %1746 = vmatpush3.bf16.msra.mxu1 %v1849_v20  ;;  %v1853_v20 = vld [vmem:[#allocation10] sm:$0xff]  }
 0x37a   :  { %1747 = vmatprep.subr.bf16.mxu1 %v2091_v0 }
 0x37d   :  { %1748 = vmatpush3.bf16.msra.mxu1 %v1850_v21  ;;  %v1854_v21 = vld [vmem:[#allocation10 + $0x48] sm:$0xff]  }
 0x37e   :  { %1749 = vmatprep.subr.bf16.mxu1 %v2091_v0 }
 0x381   :  { %1750 = vmatpush3.bf16.msra.mxu1 %v1851_v22  ;;  %v1855_v22 = vld [vmem:[#allocation10 + $0x8] sm:$0xff]  }
 0x382   :  { %1775 = vmatprep.subr.bf16.mxu1 %v2091_v0 }
 0x437   :  { %v1640_v23 = vpop.f32.mrb[12].mxu1 }
 0x438   :  { %v1641_v25 = vpop.f32.mrb[13].mxu1 }
 0x439   :  { %v1642_v26 = vadd.f32 %v1641_v25, %v1640_v23  ;;  %v1643_v27 = vpop.f32.mrb[14].mxu1  ;;  %v1856_v23 = vld [vmem:[#allocation10 + $0x50] sm:$0xff]   ;;  %v1859_v25 = vld [vmem:[#allocation10 + $0x18] sm:$0xff]  }
 0x43a   :  { %v1644_v28 = vpop.f32.mrb[15].mxu1 }
 0x43b   :  { %v777_v29 = vadd.f32 %v1642_v26, %v1523_v24  ;;  %v1645_v30 = vadd.f32 %v1644_v28, %v1643_v27  ;;  %v1860_v26 = vld [vmem:[#allocation10 + $0x60] sm:$0xff]   ;;  %v1862_v28 = vld [vmem:[#allocation10 + $0x68] sm:$0xff]  }
 0x43c   :  { %v1861_v27 = vld [vmem:[#allocation10 + $0x20] sm:$0xff]  }
 0x43d   :  { %v783_v32 = vmul.f32 %v777_v29, %v2336_v51  ;;  %v780_v33 = vadd.f32 %v1645_v30, %v1523_v24  ;;  %v1857_v24 = vld [vmem:[#allocation10 + $0x10] sm:$0xff]   ;;  %v1863_v29 = vld [vmem:[#allocation10 + $0x28] sm:$0xff]  }
 0x43e   :  { %v1865_v30 = vld [vmem:[#allocation10 + $0x30] sm:$0xff]  }
 0x43f   :  { %v785_v34 = vmax.f32 %v783_v32, 0.0  ;;  %v784_v35 = vmul.f32 %v780_v33, %v2342_v61  ;;  %v1866_v32 = vld [vmem:[#allocation10 + $0x78] sm:$0xff]  }
 0x440   :  { %v1867_v33 = vld [vmem:[#allocation10 + $0x38] sm:$0xff]  }
 0x441   :  { %v786_v36 = vmax.f32 %v784_v35, 0.0  ;;  %v795_v39 = vmul.f32 %v785_v34, %v785_v34 }
 0x443   :  { %v787_v40 = vadd.f32 %v786_v36, %v785_v34  ;;  %v796_v41 = vmul.f32 %v786_v36, %v786_v36 }
 0x445   :  { %v788_v42 = vrot.slane %v787_v40, 4  ;;  %v797_v44 = vadd.f32 %v796_v41, %v795_v39 }
 0x447   :  { %v789_v45 = vadd.f32 %v788_v42, %v787_v40  ;;  %v798_v46 = vrot.slane %v797_v44, 4 }
 0x449   :  { %v790_v47 = vrot.slane %v789_v45, 2  ;;  %v799_v48 = vadd.f32 %v798_v46, %v797_v44 }
 0x44b   :  { %v791_v49 = vadd.f32 %v790_v47, %v789_v45  ;;  %v800_v50 = vrot.slane %v799_v48, 2 }
 0x44d   :  { %v792_v52 = vrot.slane %v791_v49, 1  ;;  %v801_v53 = vadd.f32 %v800_v50, %v799_v48  ;;  %v1868_v50 = vld [vmem:[%s2497_s15] sm:$0xff]  }
 0x44f   :  { %v793_v54 = vadd.f32 %v792_v52, %v791_v49  ;;  %v802_v55 = vrot.slane %v801_v53, 1 }
 0x451   :  { %v794_v56 = vmul.f32 0.0625, %v793_v54  ;;  %v803_v57 = vadd.f32 %v802_v55, %v801_v53  ;;  %v1869_v54 = vld [vmem:[%s2497_s15 + $0x8] sm:$0xff]   ;;  %v1872_v55 = vld [vmem:[%s2497_s15 + $0x20] sm:$0xff]  }
 0x453   :  { %v804_v58 = vmul.f32 0.0625, %v803_v57  ;;  %v805_v59 = vmul.f32 %v794_v56, %v794_v56  ;;  %v811_v60 = vsub.f32 %v786_v36, %v794_v56  ;;  %v810_v62 = vsub.f32 %v785_v34, %v794_v56  ;;  %v1873_v56 = vld [vmem:[%s2497_s15 + $0x28] sm:$0xff]   ;;  %v1874_v57 = vld [vmem:[%s2497_s15 + $0x30] sm:$0xff]  }
 0x455   :  { %v806_v63 = vsub.f32 %v804_v58, %v805_v59  ;;  %v1875_v58 = vld [vmem:[%s2497_s15 + $0x38] sm:$0xff]   ;;  %v1876_v59 = vld [vmem:[#allocation13] sm:$0xff]  }
 0x457   :  { %v807_v1 = vmax.f32 %v806_v63, 0.0  ;;  %v1879_v63 = vld [vmem:[#allocation13 + $0x18] sm:$0xff]  }
 0x459   :  { %v808_v2 = vadd.f32 1e-05, %v807_v1  ;;  %v1880_v1 = vld [vmem:[#allocation13 + $0x20] sm:$0xff]  }
 0x45b   :  { %1890 = vrsqrt.f32 %v808_v2  ;;  %v1881_v2 = vld [vmem:[#allocation13 + $0x28] sm:$0xff]  }
 0x465   :  { %v1891_v4 = vpop.eup %1890 }
 0x466   :  { %v813_v5 = vmul.f32 %v1891_v4, %v812_v3  ;;  %v1883_v3 = vld [vmem:[#allocation13 + $0x38] sm:$0xff]  }
 0x468   :  { %v817_v6 = vrot.slane %v813_v5, %v2348_v31  ;;  %v1545_v5 = vld [vmem:[%s2494_s12] ss:$0 sm:$0xff] }
 0x46a   :  { %v818_v9 = vmul.f32 %v817_v6, %v810_v62  ;;  %v819_v10 = vmul.f32 %v817_v6, %v811_v60  ;;  %v1877_v60 = vld [vmem:[#allocation13 + $0x8] sm:$0xff]   ;;  %v1878_v62 = vld [vmem:[#allocation13 + $0x10] sm:$0xff]  }
 0x46c   :  { %v827_v11 = vadd.f32 %v1540_v7, %v818_v9  ;;  %v828_v13 = vadd.f32 %v1540_v7, %v819_v10 }
 0x46e   :  { %v829_v14 = vpack.c.bf16 %v828_v13, %v827_v11  ;;  %v1592_v15 = vpack.c.bf16 %v827_v11, %v827_v11  ;;  %v1593_v17 = vpack.c.bf16 %v828_v13, %v828_v13 }
 0x470   :  { %1752 = vmatmul.mubr.bf16.vlgmr.msra.gmra.mrb[16].mxu1 %v829_v14  ;;  %v836_v16 = vsel %vm187_vm1, %v1592_v15, 0  ;;  %v879_v19 = vsel %vm187_vm1, %v1593_v17, 0 }
 0x471   :  { %1724 = vmatpush3.bf16.msra.mxu0 %v836_v16  ;;  %1791 = vmatprep.mubr.msk.bf16.mxu1 %vm2092_vm0, %v2091_v0 }
 0x472   :  { %1729 = vmatprep.subr.bf16.mxu0 %v2091_v0  ;;  %1776 = vmatpush3.bf16.msra.mxu1 %v1876_v59 }
 0x473   :  { %1777 = vmatprep.subr.bf16.mxu1 %v2091_v0 }
 0x474   :  { %1726 = vmatmul.mubr.msk.bf16.vlgmr.msra.gmra.mrb[8].mxu0 %vm165_vm2, %v2307_v8  ;;  %v1858_v8 = vld [vmem:[#allocation10 + $0x58] sm:$0xff]  }
 0x475   :  { %1730 = vmatpush3.bf16.msra.mxu0 %v879_v19  ;;  %1731 = vmatprep.mubr.msk.bf16.mxu0 %vm2092_vm0, %v2091_v0 }
 0x476   :  { %1650 = vmatprep.subr.bf16.mxu0 %v1852_v18  ;;  %1778 = vmatpush3.bf16.msra.mxu1 %v1877_v60 }
 0x477   :  { %1779 = vmatprep.subr.bf16.mxu1 %v2091_v0 }
 0x47a   :  { %1780 = vmatpush3.bf16.msra.mxu1 %v1878_v62 }
 0x47b   :  { %1781 = vmatprep.subr.bf16.mxu1 %v2091_v0 }
 0x47c   :  { %1732 = vmatmul.mubr.msk.bf16.vlgmr.msra.gmra.mrb[12].mxu0 %vm165_vm2, %v2311_v12  ;;  %v1864_v12 = vld [vmem:[#allocation10 + $0x70] sm:$0xff]  }
 0x47d   :  { %1091 = vmatprep.mubr.bf16.mxu0 %v829_v14  ;;  %1651 = vmatpush3.bf16.msra.mxu0 %v1853_v20 }
 0x47e   :  { %1652 = vmatprep.subr.bf16.mxu0 %v1854_v21  ;;  %1782 = vmatpush3.bf16.msra.mxu1 %v1879_v63 }
 0x47f   :  { %1783 = vmatprep.subr.bf16.mxu1 %v2091_v0 }
 0x481   :  { %1653 = vmatpush3.bf16.msra.mxu0 %v1855_v22 }
 0x482   :  { %1654 = vmatprep.subr.bf16.mxu0 %v1856_v23  ;;  %1784 = vmatpush3.bf16.msra.mxu1 %v1880_v1 }
 0x483   :  { %1785 = vmatprep.subr.bf16.mxu1 %v2091_v0 }
 0x485   :  { %1655 = vmatpush3.bf16.msra.mxu0 %v1857_v24 }
 0x486   :  { %1656 = vmatprep.subr.bf16.mxu0 %v1858_v8  ;;  %1786 = vmatpush3.bf16.msra.mxu1 %v1881_v2 }
 0x487   :  { %1787 = vmatprep.subr.bf16.mxu1 %v2091_v0 }
 0x489   :  { %1657 = vmatpush3.bf16.msra.mxu0 %v1859_v25 }
 0x48a   :  { %1658 = vmatprep.subr.bf16.mxu0 %v1860_v26 }
 0x48d   :  { %1659 = vmatpush3.bf16.msra.mxu0 %v1861_v27 }
 0x48e   :  { %1660 = vmatprep.subr.bf16.mxu0 %v1862_v28 }
 0x491   :  { %1661 = vmatpush3.bf16.msra.mxu0 %v1863_v29 }
 0x492   :  { %1662 = vmatprep.subr.bf16.mxu0 %v1864_v12 }
 0x495   :  { %1663 = vmatpush3.bf16.msra.mxu0 %v1865_v30 }
 0x496   :  { %1664 = vmatprep.subr.bf16.mxu0 %v1866_v32 }
 0x499   :  { %1665 = vmatpush3.bf16.msra.mxu0 %v1867_v33 }
 0x49a   :  { %1755 = vmatprep.subr.bf16.mxu0 %v2091_v0 }
 0x543   :  { %v2403_v34 = vpop.f32.mrb[16].mxu1 }
 0x544   :  { %v1753_v35 = vpop.f32.mrb[17].mxu1 }
 0x545   :  { %v2405_v36 = vpop.f32.mrb[18].mxu1 }
 0x546   :  { %v1754_v39 = vpop.f32.mrb[19].mxu1 }
 0x547   :  { %v872_v40 = vpop.f32.mrb[8].mxu0 }
 0x548   :  { %v1727_v41 = vpop.f32.mrb[9].mxu0  ;;  %v921_v46 = vmul.f32 %v2330_v38, %v872_v40  ;;  %v1871_v38 = vld [vmem:[%s2497_s15 + $0x18] sm:$0xff]  }
 0x549   :  { %v875_v42 = vpop.f32.mrb[10].mxu0 }
 0x54a   :  { %v1728_v44 = vpop.f32.mrb[11].mxu0 }
 0x54f   :  { %v915_v45 = vpop.f32.mrb[12].mxu0 }
 0x550   :  { %v922_v47 = vmul.f32 %v2328_v37, %v915_v45  ;;  %v1733_v48 = vpop.f32.mrb[13].mxu0  ;;  %v1870_v37 = vld [vmem:[%s2497_s15 + $0x10] sm:$0xff]  }
 0x551   :  { %v918_v49 = vpop.f32.mrb[14].mxu0 }
 0x552   :  { %v923_v52 = vpack.c.bf16 %v922_v47, %v921_v46  ;;  %v1734_v53 = vpop.f32.mrb[15].mxu0 }
 0x554   :  { %1092 = vmatmul.mubr.bf16.vlgmr.msra.gmra.mrb[16].mxu0 %v923_v52 }
 0x555   :  { %1756 = vmatpush3.bf16.msra.mxu0 %v1868_v50  ;;  %1771 = vmatprep.mubr.msk.bf16.mxu0 %vm2092_vm0, %v2091_v0  ;;  %v1129_v50 = vld [vmem:[%s2495_s13] sm:$0x1]  ;;  %s2094_s13 = smov [#allocation14]  }
 0x556   :  { %1757 = vmatprep.subr.bf16.mxu0 %v2091_v0  ;;  %s1482_s20 = sshll.u32 %s2094_s13, 4  ;;  %s1483_s20 = int_to_ptr.vmem [resolvable:$true] %s1482_s20 }
 0x557   :  { %p2053_p1 = scmp.lt.s32.totalorder %s1483_s20, %s1483_s20 }
 0x559   :  { %1758 = vmatpush3.bf16.msra.mxu0 %v1869_v54 }
 0x55a   :  { %1759 = vmatprep.subr.bf16.mxu0 %v2091_v0 }
 0x55d   :  { %1760 = vmatpush3.bf16.msra.mxu0 %v1870_v37  ;;  %v1562_v37 = vld [vmem:[%s2496_s14] ss:$0 sm:$0xff]  ;;  %s2048_s14 = scalar_lea.vmem %s1483_s20, 256 }
 0x55e   :  { %1761 = vmatprep.subr.bf16.mxu0 %v2091_v0  ;;  %p2049_p0 = scmp.ne.s32.totalorder %s1483_s20, %s2048_s14  ;;  %p2054_p2 = scmp.lt.s32.totalorder %s2048_s14, %s2048_s14 }
 0x560   :  { %p2055_p3 = por %p2054_p2, %p2053_p1 }
 0x561   :  { %1762 = vmatpush3.bf16.msra.mxu0 %v1871_v38 }
 0x562   :  { %1763 = vmatprep.subr.bf16.mxu0 %v2091_v0  ;;  %p2056_p4 = pnand %p2055_p3, %p2049_p0 }
 0x565   :  { %1764 = vmatpush3.bf16.msra.mxu0 %v1872_v55 }
 0x566   :  { %1765 = vmatprep.subr.bf16.mxu0 %v2091_v0 }
 0x569   :  { %1766 = vmatpush3.bf16.msra.mxu0 %v1873_v56 }
 0x56a   :  { %1767 = vmatprep.subr.bf16.mxu0 %v2091_v0 }
 0x56d   :  { %1768 = vmatpush3.bf16.msra.mxu0 %v1874_v57 }
 0x56e   :  { %1769 = vmatprep.subr.bf16.mxu0 %v2091_v0 }
 0x571   :  { %1770 = vmatpush3.bf16.msra.mxu0 %v1875_v58  ;;  %v1587_v58 = vld [vmem:[%s2520_s16] ss:$0 sm:$0xff] }
 0x574   :  { %1772 = vmatmul.mubr.bf16.vlgmr.msra.gmra.mrb[20].mxu0 %v2354_v43  ;;  %v1882_v43 = vld [vmem:[#allocation13 + $0x30] sm:$0xff]  }
 0x575   :  { %1788 = vmatpush3.bf16.msra.mxu1 %v1882_v43 }
 0x576   :  { %1789 = vmatprep.subr.bf16.mxu1 %v2091_v0 }
 0x579   :  { %1790 = vmatpush3.bf16.msra.mxu1 %v1883_v3 }
 0x627   :  { %v1666_v4 = vpop.f32.mrb[16].mxu0 }
 0x628   :  { %v1667_v6 = vpop.f32.mrb[17].mxu0 }
 0x629   :  { %v1668_v7 = vadd.f32 %v1667_v6, %v1666_v4  ;;  %v1669_v9 = vpop.f32.mrb[18].mxu0 }
 0x62a   :  { %v1670_v10 = vpop.f32.mrb[19].mxu0 }
 0x62b   :  { %v1094_v11 = vadd.f32 %v1668_v7, %v1545_v5  ;;  %v1671_v13 = vadd.f32 %v1670_v10, %v1669_v9 }
 0x62d   :  { %v1100_v14 = vmul.f32 %v1094_v11, %v2336_v51  ;;  %v1097_v15 = vadd.f32 %v1671_v13, %v1545_v5 }
 0x62f   :  { %v1102_v16 = vmax.f32 %v1100_v14, 0.0  ;;  %v1101_v17 = vmul.f32 %v1097_v15, %v2342_v61 }
 0x631   :  { %v1103_v18 = vmax.f32 %v1101_v17, 0.0  ;;  %v1112_v0 = vmul.f32 %v1102_v16, %v1102_v16 }
 0x633   :  { %v1104_v19 = vadd.f32 %v1103_v18, %v1102_v16  ;;  %v1113_v20 = vmul.f32 %v1103_v18, %v1103_v18 }
 0x635   :  { %v1105_v21 = vrot.slane %v1104_v19, 4  ;;  %v1114_v22 = vadd.f32 %v1113_v20, %v1112_v0 }
 0x637   :  { %v1106_v23 = vadd.f32 %v1105_v21, %v1104_v19  ;;  %v1115_v24 = vrot.slane %v1114_v22, 4 }
 0x639   :  { %v1107_v8 = vrot.slane %v1106_v23, 2  ;;  %v1116_v25 = vadd.f32 %v1115_v24, %v1114_v22 }
 0x63b   :  { %v1108_v26 = vadd.f32 %v1107_v8, %v1106_v23  ;;  %v1117_v27 = vrot.slane %v1116_v25, 2 }
 0x63d   :  { %v1109_v28 = vrot.slane %v1108_v26, 1  ;;  %v1118_v29 = vadd.f32 %v1117_v27, %v1116_v25 }
 0x63f   :  { %v1110_v12 = vadd.f32 %v1109_v28, %v1108_v26  ;;  %v1119_v51 = vrot.slane %v1118_v29, 1 }
 0x641   :  { %v1111_v30 = vmul.f32 0.0625, %v1110_v12  ;;  %v1120_v32 = vadd.f32 %v1119_v51, %v1118_v29 }
 0x643   :  { %v1121_v33 = vmul.f32 0.0625, %v1120_v32  ;;  %v1122_v61 = vmul.f32 %v1111_v30, %v1111_v30  ;;  %v1128_v35 = vsub.f32 %v1103_v18, %v1111_v30  ;;  %v1127_v39 = vsub.f32 %v1102_v16, %v1111_v30 }
 0x645   :  { %v1123_v40 = vsub.f32 %v1121_v33, %v1122_v61 }
 0x647   :  { %v1124_v41 = vmax.f32 %v1123_v40, 0.0  ;;  %v1349_v42 = vpop.f32.mrb[20].mxu0 }
 0x648   :  { %v1350_v44 = vadd.f32 %v1349_v42, %v2403_v34  ;;  %v1773_v45 = vpop.f32.mrb[21].mxu0 }
 0x649   :  { %v1125_v46 = vadd.f32 1e-05, %v1124_v41  ;;  %v1352_v47 = vpop.f32.mrb[22].mxu0 }
 0x64a   :  { %v1353_v48 = vadd.f32 %v1352_v47, %v2405_v36  ;;  %v1774_v49 = vpop.f32.mrb[23].mxu0 }
 0x64b   :  { %1892 = vrsqrt.f32 %v1125_v46 }
 0x655   :  { %v1893_v52 = vpop.eup %1892 }
 0x656   :  { %v1130_v53 = vmul.f32 %v1893_v52, %v1129_v50 }
 0x658   :  { %v1134_v54 = vrot.slane %v1130_v53, %v2348_v31 }
 0x65a   :  { %v1135_v34 = vmul.f32 %v1134_v54, %v1127_v39  ;;  %v1136_v38 = vmul.f32 %v1134_v54, %v1128_v35 }
 0x65c   :  { %v1144_v55 = vadd.f32 %v1562_v37, %v1135_v34  ;;  %v1145_v56 = vadd.f32 %v1562_v37, %v1136_v38 }
 0x65e   :  { %v1356_v57 = vpack.c.bf16 %v1145_v56, %v1144_v55 }
 0x660   :  { %1792 = vmatmul.mubr.bf16.vlgmr.msra.gmra.mrb[20].mxu1 %v1356_v57 }
 0x733   :  { %v1455_v36 = vpop.f32.mrb[20].mxu1 }
 0x734   :  { %v1462_v59 = vadd.f32 %v1455_v36, %v1350_v44  ;;  %v1793_v60 = vpop.f32.mrb[21].mxu1 }
 0x735   :  { %v1458_v62 = vpop.f32.mrb[22].mxu1 }
 0x736   :  { %v1471_v63 = vadd.f32 %v1587_v58, %v1462_v59  ;;  %v1463_v31 = vadd.f32 %v1458_v62, %v1353_v48  ;;  %v1794_v1 = vpop.f32.mrb[23].mxu1 }
 0x738   :  { %v1473_v2 = vmax.f32 %v1471_v63, 0.0  ;;  %v1472_v43 = vadd.f32 %v1587_v58, %v1463_v31 }
 0x73a   :  { %1475 = vst [vmem:[#allocation14] sm:$0xff] %v1473_v2  ;;  %v1474_v3 = vmax.f32 %v1472_v43, 0.0 }
 0x73c   :  { %1476 = vst [vmem:[#allocation14 + $0x8] sm:$0xff] %v1474_v3 }
 0x73d   :  { %2059 = shalt.err (!%p2056_p4)
}
 0x73e   :  { %s2521_s10 = sld [smem:[#allocation25_spill]] }
 0x744   :  { %s2060_s19 = scalar_lea.hbm %s2521_s10, 256 }
 0x745   :  { %p2061_p5 = scmp.ne.s32.totalorder %s2521_s10, %s2060_s19  ;;  %p2064_p6 = scmp.lt.u32.totalorder %s2060_s19, %s2521_s10 }
 0x747   :  { %p2066_p7 = pnand %p2064_p6, %p2061_p5 }
 0x749   :  { %2069 = shalt.err (!%p2066_p7)
}
 0x74a   :  { %1488 = dma.vmem_to_hbm [thread:$0]  %s1483_s20, 256, %s2521_s10, [#allocation4], %s2517_s22, %s2517_s22, %s2082_s27  }
 0x74b   :  { %2078 = dma.done.wait [#allocation4], 256  }
 0x74c   :  { %2079 = vsyncadd [#allocation4], 4294967040 }
 0x74d   :  { %1492 = vsyncpa [#allocation3], 1 }
 0x74e   :  { %1493 = vsyncpa [#allocation6], 1 }
 0x74f   :  { %1494 = vsyncpa [#allocation9], 1 }
 0x750   :  { %1495 = vsyncpa [#allocation12], 1 }
 0x751   :  { %1496 = vsyncpa [#allocation4], 1 }

</bundles_post_ra>
